<compile_context>
chip_gen: v5e
topology: v5e:2x2
jax: 0.10.0
libtpu: 0.0.40
codegen_flags: <defaults>
</compile_context>

<pallas_src>
import functools

import jax
import jax.numpy as jnp
from jax.experimental import pallas as pl
from jax.experimental.pallas import tpu as pltpu

SUBLANE = 8          # sublane alignment for the batch (row) tile
TM_MAX = 2048        # max rows per batch tile (amortizes per-grid-step overhead)
TARGET_GRID = 4      # keep >=4 grid steps on large batches (v7x megacore sharding)


def _round_up(n, m):
    return ((n + m - 1) // m) * m


def _choose_tm(batch):
    """Batch tile: as large as practical (multiple of 8), but keep >=TARGET_GRID
    grid steps for large batches so ("parallel",) can shard across v7x's 2 TCs."""
    if batch <= SUBLANE:
        return batch                              # block == full batch dim (legal)
    tm = _round_up(pl.cdiv(batch, TARGET_GRID), SUBLANE)
    return max(SUBLANE, min(TM_MAX, tm))


def actor_kernel(x_ref, w1_ref, b1_ref, w2_ref, b2_ref, w3_ref, b3_ref,
                 mean_ref, *, compute_dtype):
    # x arrives f32 straight from HBM (no wrapper pad/cast pass); cast on-chip.
    x = x_ref[...].astype(compute_dtype)

    # Layer 1: Linear + ReLU  (MXU matmul in compute_dtype, f32 accumulate;
    # bias/ReLU/tanh stay f32 -- v5e has no bf16 VPU/EUP path).
    h1 = jnp.dot(x, w1_ref[...], preferred_element_type=jnp.float32) + b1_ref[...]
    h1 = jnp.maximum(h1, 0.0).astype(compute_dtype)

    # Layer 2: Linear + ReLU
    h2 = jnp.dot(h1, w2_ref[...], preferred_element_type=jnp.float32) + b2_ref[...]
    h2 = jnp.maximum(h2, 0.0).astype(compute_dtype)

    # Mean head: Linear + tanh (reference calls mean_layer twice; only the
    # tanh'd result is returned, so a single matmul suffices).
    m = jnp.dot(h2, w3_ref[...], preferred_element_type=jnp.float32) + b3_ref[...]
    mean_ref[...] = jnp.tanh(m).astype(mean_ref.dtype)


def prepare_params(params, compute_dtype=jnp.bfloat16):
    """One-time prep: cast matmul weights to the MXU compute dtype, keep biases
    in f32, and precompute std (input-independent -> not a kernel output)."""
    prepped = dict(
        w1=params["w1"].astype(compute_dtype),
        b1=params["b1"].astype(jnp.float32),
        w2=params["w2"].astype(compute_dtype),
        b2=params["b2"].astype(jnp.float32),
        w3=params["w3"].astype(compute_dtype),
        b3=params["b3"].astype(jnp.float32),
        std=jnp.exp(jnp.clip(params["log_std"], -20.0, 2.0)).astype(jnp.float32),
    )
    meta = dict(
        obs_dim=params["w1"].shape[0],
        hidden_1=params["w1"].shape[1],
        hidden_2=params["w2"].shape[1],
        action_dim=params["w3"].shape[1],
        compute_dtype=compute_dtype,
    )
    return prepped, meta


def _vmem_limit_bytes(tm, meta, compute_dtype):
    """Generation-aware scoped-VMEM budget with headroom."""
    cd = jnp.dtype(compute_dtype).itemsize
    obs, h1, h2, act = (meta["obs_dim"], meta["hidden_1"],
                        meta["hidden_2"], meta["action_dim"])
    weight_bytes = (obs * h1 + h1 * h2 + h2 * act) * cd + (h1 + h2 + act) * 4
    # double-buffered (pipelined) x and mean tiles
    act_bytes = 2 * (tm * obs * 4 + tm * act * 4)
    # large intermediates (h1/h2/mean in f32 + compute-dtype copies) live in VMEM
    interm_bytes = 6 * tm * max(h1, h2, act) * 4
    need = 2 * weight_bytes + act_bytes + interm_bytes + (2 << 20)
    try:
        cap = int(pltpu.get_tpu_info().vmem_capacity_bytes)
    except Exception:
        cap = 64 << 20                      # conservative: v7x per-core VMEM
    cap = int(cap * 0.75)                   # leave ~25% headroom for the compiler
    return max(16 << 20, min(need, cap))


def actor_forward(x, prepped, meta):
    """x: (B, obs_dim) float32.  Returns (mean, std), each (B, action_dim) f32."""
    B, obs_dim = x.shape
    assert obs_dim == meta["obs_dim"]
    action_dim = meta["action_dim"]
    compute_dtype = meta["compute_dtype"]

    TM = _choose_tm(B)
    grid = (pl.cdiv(B, TM),)
    vmem_limit = _vmem_limit_bytes(TM, meta, compute_dtype)

    w1, b1 = prepped["w1"], prepped["b1"]
    w2, b2 = prepped["w2"], prepped["b2"]
    w3, b3 = prepped["w3"], prepped["b3"]

    def call(resident_mode):
        def resident(a):
            kwargs = {} if resident_mode is None else {"pipeline_mode": resident_mode}
            return pl.BlockSpec(a.shape, lambda i: (0,) * a.ndim, **kwargs)

        return pl.pallas_call(
            functools.partial(actor_kernel, compute_dtype=compute_dtype),
            out_shape=jax.ShapeDtypeStruct((B, action_dim), jnp.float32),
            grid=grid,
            in_specs=[
                # x tile: pipelined over the batch, fed as-is (f32, unpadded);
                # last dim equals the full array dim, so this block is legal.
                pl.BlockSpec((TM, obs_dim), lambda i: (i, 0)),
                resident(w1), resident(b1),
                resident(w2), resident(b2),
                resident(w3), resident(b3),
            ],
            # Un-padded output block: no 16x write amplification, no post-slice.
            out_specs=pl.BlockSpec((TM, action_dim), lambda i: (i, 0)),
            compiler_params=pltpu.CompilerParams(
                dimension_semantics=("parallel",),   # shard batch tiles on v7x
                vmem_limit_bytes=vmem_limit,
            ),
        )(x, w1, b1, w2, b2, w3, b3)

    try:
        # Constant-index-map weights/biases don't need double buffers.
        mean = call(pl.Buffered(1))
    except Exception:
        mean = call(None)

    std = jnp.broadcast_to(prepped["std"], (B, action_dim))
    return mean, std


def init_params(key, obs_dim, action_dim, hidden_1=128, hidden_2=128):
    """Deterministic init mimicking nn.Linear default (uniform +/- 1/sqrt(fan_in)).
    Weights stored as (in_features, out_features) so the kernel computes x @ W + b."""
    ks = jax.random.split(key, 6)

    def linear(kw, kb, fan_in, fan_out):
        bound = 1.0 / jnp.sqrt(fan_in)
        w = jax.random.uniform(kw, (fan_in, fan_out), jnp.float32, -bound, bound)
        b = jax.random.uniform(kb, (1, fan_out), jnp.float32, -bound, bound)
        return w, b

    w1, b1 = linear(ks[0], ks[1], obs_dim, hidden_1)
    w2, b2 = linear(ks[2], ks[3], hidden_1, hidden_2)
    w3, b3 = linear(ks[4], ks[5], hidden_2, action_dim)
    log_std = jnp.zeros((1, action_dim), jnp.float32)  # nn.Parameter(torch.zeros(1, action_dim))
    return dict(w1=w1, b1=b1, w2=w2, b2=b2, w3=w3, b3=b3, log_std=log_std)


def actor_reference(x, p):
    h1 = jax.nn.relu(x @ p["w1"] + p["b1"])
    h2 = jax.nn.relu(h1 @ p["w2"] + p["b2"])
    mean = jnp.tanh(h2 @ p["w3"] + p["b3"])
    std = jnp.exp(jnp.clip(p["log_std"], -20.0, 2.0))
    return mean, jnp.broadcast_to(std, mean.shape)


if __name__ == "__main__":
    key = jax.random.PRNGKey(0)
    k_param, k_x = jax.random.split(key)

    B, obs_dim, action_dim = 8, 32, 8
    params = init_params(k_param, obs_dim, action_dim, hidden_1=128, hidden_2=128)
    x = jax.random.normal(k_x, (B, obs_dim), jnp.float32)

    prepped, meta = prepare_params(params, compute_dtype=jnp.bfloat16)
    mean, std = actor_forward(x, prepped, meta)
    jax.block_until_ready((mean, std))

    mean_ref, std_ref = actor_reference(x, params)
    assert mean.shape == (B, action_dim) and std.shape == (B, action_dim)
    # Matmuls run in bf16 on the MXU (f32 accumulate) -> loose tolerance on mean.
    assert jnp.allclose(mean, mean_ref, atol=3e-2, rtol=3e-2)
    # std is computed exactly in f32 outside the kernel.
    assert jnp.allclose(std, std_ref, atol=1e-6, rtol=1e-6)

    print("KERNEL_OK")
</pallas_src>

<mosaic_0001>
module attributes {stable_mosaic.version = 11 : i64} {
  func.func @actor_kernel(%arg0: i32, %arg1: memref<8x32xf32, #tpu.memory_space<vmem>>, %arg2: memref<32x128xbf16, #tpu.memory_space<vmem>>, %arg3: memref<1x128xf32, #tpu.memory_space<vmem>>, %arg4: memref<128x128xbf16, #tpu.memory_space<vmem>>, %arg5: memref<1x128xf32, #tpu.memory_space<vmem>>, %arg6: memref<128x8xbf16, #tpu.memory_space<vmem>>, %arg7: memref<1x8xf32, #tpu.memory_space<vmem>>, %arg8: memref<8x8xf32, #tpu.memory_space<vmem>>) attributes {dimension_semantics = [#tpu.dimension_semantics<parallel>], iteration_bounds = array<i64: 1>, scalar_prefetch = 0 : i64, scratch_operands = 0 : i64, tpu.core_type = #tpu.core_type<tc>, window_params = [{transform_indices = @transform_0, window_bounds = array<i64: 8, 32>}, {pipeline_mode = #tpu.pipeline_mode<synchronous>, transform_indices = @transform_1, window_bounds = array<i64: 32, 128>}, {pipeline_mode = #tpu.pipeline_mode<synchronous>, transform_indices = @transform_2, window_bounds = array<i64: 1, 128>}, {pipeline_mode = #tpu.pipeline_mode<synchronous>, transform_indices = @transform_3, window_bounds = array<i64: 128, 128>}, {pipeline_mode = #tpu.pipeline_mode<synchronous>, transform_indices = @transform_4, window_bounds = array<i64: 1, 128>}, {pipeline_mode = #tpu.pipeline_mode<synchronous>, transform_indices = @transform_5, window_bounds = array<i64: 128, 8>}, {pipeline_mode = #tpu.pipeline_mode<synchronous>, transform_indices = @transform_6, window_bounds = array<i64: 1, 8>}, {transform_indices = @transform_7, window_bounds = array<i64: 8, 8>}]} {
    %c0 = arith.constant 0 : index
    %c0_0 = arith.constant 0 : index
    %0 = vector.load %arg1[%c0, %c0_0] : memref<8x32xf32, #tpu.memory_space<vmem>>, vector<8x32xf32>
    %1 = arith.truncf %0 : vector<8x32xf32> to vector<8x32xbf16>
    %c0_1 = arith.constant 0 : index
    %c0_2 = arith.constant 0 : index
    %2 = vector.load %arg2[%c0_1, %c0_2] : memref<32x128xbf16, #tpu.memory_space<vmem>>, vector<32x128xbf16>
    %cst = arith.constant dense<0.000000e+00> : vector<8x128xf32>
    %3 = tpu.matmul %1, %2, %cst {dimension_numbers = #tpu.dot_dimension_numbers<[1], [0], [0], [1], [0, 0, 1, 1], [], []>} : vector<8x32xbf16>, vector<32x128xbf16>, vector<8x128xf32> -> vector<8x128xf32>
    %c0_3 = arith.constant 0 : index
    %c0_4 = arith.constant 0 : index
    %4 = vector.load %arg3[%c0_3, %c0_4] : memref<1x128xf32, #tpu.memory_space<vmem>>, vector<1x128xf32>
    %5 = vector.broadcast %4 : vector<1x128xf32> to vector<8x128xf32>
    %6 = arith.addf %3, %5 : vector<8x128xf32>
    %cst_5 = arith.constant 0.000000e+00 : f32
    %7 = vector.broadcast %cst_5 : f32 to vector<8x128xf32>
    %8 = arith.maximumf %6, %7 : vector<8x128xf32>
    %9 = arith.truncf %8 : vector<8x128xf32> to vector<8x128xbf16>
    %c0_6 = arith.constant 0 : index
    %c0_7 = arith.constant 0 : index
    %10 = vector.load %arg4[%c0_6, %c0_7] : memref<128x128xbf16, #tpu.memory_space<vmem>>, vector<128x128xbf16>
    %cst_8 = arith.constant dense<0.000000e+00> : vector<8x128xf32>
    %11 = tpu.matmul %9, %10, %cst_8 {dimension_numbers = #tpu.dot_dimension_numbers<[1], [0], [0], [1], [0, 0, 1, 1], [], []>} : vector<8x128xbf16>, vector<128x128xbf16>, vector<8x128xf32> -> vector<8x128xf32>
    %c0_9 = arith.constant 0 : index
    %c0_10 = arith.constant 0 : index
    %12 = vector.load %arg5[%c0_9, %c0_10] : memref<1x128xf32, #tpu.memory_space<vmem>>, vector<1x128xf32>
    %13 = vector.broadcast %12 : vector<1x128xf32> to vector<8x128xf32>
    %14 = arith.addf %11, %13 : vector<8x128xf32>
    %cst_11 = arith.constant 0.000000e+00 : f32
    %15 = vector.broadcast %cst_11 : f32 to vector<8x128xf32>
    %16 = arith.maximumf %14, %15 : vector<8x128xf32>
    %17 = arith.truncf %16 : vector<8x128xf32> to vector<8x128xbf16>
    %c0_12 = arith.constant 0 : index
    %c0_13 = arith.constant 0 : index
    %18 = vector.load %arg6[%c0_12, %c0_13] : memref<128x8xbf16, #tpu.memory_space<vmem>>, vector<128x8xbf16>
    %cst_14 = arith.constant dense<0.000000e+00> : vector<8x8xf32>
    %19 = tpu.matmul %17, %18, %cst_14 {dimension_numbers = #tpu.dot_dimension_numbers<[1], [0], [0], [1], [0, 0, 1, 1], [], []>} : vector<8x128xbf16>, vector<128x8xbf16>, vector<8x8xf32> -> vector<8x8xf32>
    %c0_15 = arith.constant 0 : index
    %c0_16 = arith.constant 0 : index
    %20 = vector.load %arg7[%c0_15, %c0_16] : memref<1x8xf32, #tpu.memory_space<vmem>>, vector<1x8xf32>
    %21 = vector.broadcast %20 : vector<1x8xf32> to vector<8x8xf32>
    %22 = arith.addf %19, %21 : vector<8x8xf32>
    %23 = math.tanh %22 : vector<8x8xf32>
    %c0_17 = arith.constant 0 : index
    %c0_18 = arith.constant 0 : index
    %24 = vector.load %arg8[%c0_17, %c0_18] : memref<8x8xf32, #tpu.memory_space<vmem>>, vector<8x8xf32>
    tpu.vector_store %arg8[%c0_17, %c0_18], %23 {strides = array<i32>} : memref<8x8xf32, #tpu.memory_space<vmem>>, vector<8x8xf32>,
    return
  }
  func.func @transform_0(%arg0: i32) -> (i32, i32) {
    %c0_i32 = arith.constant 0 : i32
    %c0_i32_0 = arith.constant 0 : i32
    return %arg0, %c0_i32 : i32, i32
  }
  func.func @transform_1(%arg0: i32) -> (i32, i32) {
    %c0_i32 = arith.constant 0 : i32
    %c0_i32_0 = arith.constant 0 : i32
    %c0_i32_1 = arith.constant 0 : i32
    return %c0_i32, %c0_i32_0 : i32, i32
  }
  func.func @transform_2(%arg0: i32) -> (i32, i32) {
    %c0_i32 = arith.constant 0 : i32
    %c0_i32_0 = arith.constant 0 : i32
    %c0_i32_1 = arith.constant 0 : i32
    return %c0_i32, %c0_i32_0 : i32, i32
  }
  func.func @transform_3(%arg0: i32) -> (i32, i32) {
    %c0_i32 = arith.constant 0 : i32
    %c0_i32_0 = arith.constant 0 : i32
    %c0_i32_1 = arith.constant 0 : i32
    return %c0_i32, %c0_i32_0 : i32, i32
  }
  func.func @transform_4(%arg0: i32) -> (i32, i32) {
    %c0_i32 = arith.constant 0 : i32
    %c0_i32_0 = arith.constant 0 : i32
    %c0_i32_1 = arith.constant 0 : i32
    return %c0_i32, %c0_i32_0 : i32, i32
  }
  func.func @transform_5(%arg0: i32) -> (i32, i32) {
    %c0_i32 = arith.constant 0 : i32
    %c0_i32_0 = arith.constant 0 : i32
    %c0_i32_1 = arith.constant 0 : i32
    return %c0_i32, %c0_i32_0 : i32, i32
  }
  func.func @transform_6(%arg0: i32) -> (i32, i32) {
    %c0_i32 = arith.constant 0 : i32
    %c0_i32_0 = arith.constant 0 : i32
    %c0_i32_1 = arith.constant 0 : i32
    return %c0_i32, %c0_i32_0 : i32, i32
  }
  func.func @transform_7(%arg0: i32) -> (i32, i32) {
    %c0_i32 = arith.constant 0 : i32
    %c0_i32_0 = arith.constant 0 : i32
    return %arg0, %c0_i32 : i32, i32
  }
}

module attributes {stable_mosaic.version = 11 : i64} {
  func.func @actor_kernel(%arg0: i32, %arg1: memref<8x32xf32, #tpu.memory_space<vmem>>, %arg2: memref<32x128xbf16, #tpu.memory_space<vmem>>, %arg3: memref<1x128xf32, #tpu.memory_space<vmem>>, %arg4: memref<128x128xbf16, #tpu.memory_space<vmem>>, %arg5: memref<1x128xf32, #tpu.memory_space<vmem>>, %arg6: memref<128x8xbf16, #tpu.memory_space<vmem>>, %arg7: memref<1x8xf32, #tpu.memory_space<vmem>>, %arg8: memref<8x8xf32, #tpu.memory_space<vmem>>) attributes {dimension_semantics = [#tpu.dimension_semantics<parallel>], iteration_bounds = array<i64: 1>, scalar_prefetch = 0 : i64, scratch_operands = 0 : i64, tpu.core_type = #tpu.core_type<tc>, window_params = [{transform_indices = @transform_0, window_bounds = array<i64: 8, 32>}, {pipeline_mode = #tpu.pipeline_mode<synchronous>, transform_indices = @transform_1, window_bounds = array<i64: 32, 128>}, {pipeline_mode = #tpu.pipeline_mode<synchronous>, transform_indices = @transform_2, window_bounds = array<i64: 1, 128>}, {pipeline_mode = #tpu.pipeline_mode<synchronous>, transform_indices = @transform_3, window_bounds = array<i64: 128, 128>}, {pipeline_mode = #tpu.pipeline_mode<synchronous>, transform_indices = @transform_4, window_bounds = array<i64: 1, 128>}, {pipeline_mode = #tpu.pipeline_mode<synchronous>, transform_indices = @transform_5, window_bounds = array<i64: 128, 8>}, {pipeline_mode = #tpu.pipeline_mode<synchronous>, transform_indices = @transform_6, window_bounds = array<i64: 1, 8>}, {transform_indices = @transform_7, window_bounds = array<i64: 8, 8>}]} {
    %c0 = arith.constant 0 : index
    %c0_0 = arith.constant 0 : index
    %0 = vector.load %arg1[%c0, %c0_0] : memref<8x32xf32, #tpu.memory_space<vmem>>, vector<8x32xf32>
    %1 = arith.truncf %0 : vector<8x32xf32> to vector<8x32xbf16>
    %c0_1 = arith.constant 0 : index
    %c0_2 = arith.constant 0 : index
    %2 = vector.load %arg2[%c0_1, %c0_2] : memref<32x128xbf16, #tpu.memory_space<vmem>>, vector<32x128xbf16>
    %cst = arith.constant dense<0.000000e+00> : vector<8x128xf32>
    %3 = tpu.matmul %1, %2, %cst {dimension_numbers = #tpu.dot_dimension_numbers<[1], [0], [0], [1], [0, 0, 1, 1], [], []>} : vector<8x32xbf16>, vector<32x128xbf16>, vector<8x128xf32> -> vector<8x128xf32>
    %c0_3 = arith.constant 0 : index
    %c0_4 = arith.constant 0 : index
    %4 = vector.load %arg3[%c0_3, %c0_4] : memref<1x128xf32, #tpu.memory_space<vmem>>, vector<1x128xf32>
    %5 = vector.broadcast %4 : vector<1x128xf32> to vector<8x128xf32>
    %6 = arith.addf %3, %5 : vector<8x128xf32>
    %cst_5 = arith.constant 0.000000e+00 : f32
    %7 = vector.broadcast %cst_5 : f32 to vector<8x128xf32>
    %8 = arith.maximumf %6, %7 : vector<8x128xf32>
    %9 = arith.truncf %8 : vector<8x128xf32> to vector<8x128xbf16>
    %c0_6 = arith.constant 0 : index
    %c0_7 = arith.constant 0 : index
    %10 = vector.load %arg4[%c0_6, %c0_7] : memref<128x128xbf16, #tpu.memory_space<vmem>>, vector<128x128xbf16>
    %cst_8 = arith.constant dense<0.000000e+00> : vector<8x128xf32>
    %11 = tpu.matmul %9, %10, %cst_8 {dimension_numbers = #tpu.dot_dimension_numbers<[1], [0], [0], [1], [0, 0, 1, 1], [], []>} : vector<8x128xbf16>, vector<128x128xbf16>, vector<8x128xf32> -> vector<8x128xf32>
    %c0_9 = arith.constant 0 : index
    %c0_10 = arith.constant 0 : index
    %12 = vector.load %arg5[%c0_9, %c0_10] : memref<1x128xf32, #tpu.memory_space<vmem>>, vector<1x128xf32>
    %13 = vector.broadcast %12 : vector<1x128xf32> to vector<8x128xf32>
    %14 = arith.addf %11, %13 : vector<8x128xf32>
    %cst_11 = arith.constant 0.000000e+00 : f32
    %15 = vector.broadcast %cst_11 : f32 to vector<8x128xf32>
    %16 = arith.maximumf %14, %15 : vector<8x128xf32>
    %17 = arith.truncf %16 : vector<8x128xf32> to vector<8x128xbf16>
    %c0_12 = arith.constant 0 : index
    %c0_13 = arith.constant 0 : index
    %18 = vector.load %arg6[%c0_12, %c0_13] : memref<128x8xbf16, #tpu.memory_space<vmem>>, vector<128x8xbf16>
    %cst_14 = arith.constant dense<0.000000e+00> : vector<8x8xf32>
    %19 = tpu.matmul %17, %18, %cst_14 {dimension_numbers = #tpu.dot_dimension_numbers<[1], [0], [0], [1], [0, 0, 1, 1], [], []>} : vector<8x128xbf16>, vector<128x8xbf16>, vector<8x8xf32> -> vector<8x8xf32>
    %c0_15 = arith.constant 0 : index
    %c0_16 = arith.constant 0 : index
    %20 = vector.load %arg7[%c0_15, %c0_16] : memref<1x8xf32, #tpu.memory_space<vmem>>, vector<1x8xf32>
    %21 = vector.broadcast %20 : vector<1x8xf32> to vector<8x8xf32>
    %22 = arith.addf %19, %21 : vector<8x8xf32>
    %23 = math.tanh %22 : vector<8x8xf32>
    %c0_17 = arith.constant 0 : index
    %c0_18 = arith.constant 0 : index
    %24 = vector.load %arg8[%c0_17, %c0_18] : memref<8x8xf32, #tpu.memory_space<vmem>>, vector<8x8xf32>
    tpu.vector_store %arg8[%c0_17, %c0_18], %23 {strides = array<i32>} : memref<8x8xf32, #tpu.memory_space<vmem>>, vector<8x8xf32>,
    return
  }
  func.func @transform_0(%arg0: i32) -> (i32, i32) {
    %c0_i32 = arith.constant 0 : i32
    %c0_i32_0 = arith.constant 0 : i32
    return %arg0, %c0_i32 : i32, i32
  }
  func.func @transform_1(%arg0: i32) -> (i32, i32) {
    %c0_i32 = arith.constant 0 : i32
    %c0_i32_0 = arith.constant 0 : i32
    %c0_i32_1 = arith.constant 0 : i32
    return %c0_i32, %c0_i32_0 : i32, i32
  }
  func.func @transform_2(%arg0: i32) -> (i32, i32) {
    %c0_i32 = arith.constant 0 : i32
    %c0_i32_0 = arith.constant 0 : i32
    %c0_i32_1 = arith.constant 0 : i32
    return %c0_i32, %c0_i32_0 : i32, i32
  }
  func.func @transform_3(%arg0: i32) -> (i32, i32) {
    %c0_i32 = arith.constant 0 : i32
    %c0_i32_0 = arith.constant 0 : i32
    %c0_i32_1 = arith.constant 0 : i32
    return %c0_i32, %c0_i32_0 : i32, i32
  }
  func.func @transform_4(%arg0: i32) -> (i32, i32) {
    %c0_i32 = arith.constant 0 : i32
    %c0_i32_0 = arith.constant 0 : i32
    %c0_i32_1 = arith.constant 0 : i32
    return %c0_i32, %c0_i32_0 : i32, i32
  }
  func.func @transform_5(%arg0: i32) -> (i32, i32) {
    %c0_i32 = arith.constant 0 : i32
    %c0_i32_0 = arith.constant 0 : i32
    %c0_i32_1 = arith.constant 0 : i32
    return %c0_i32, %c0_i32_0 : i32, i32
  }
  func.func @transform_6(%arg0: i32) -> (i32, i32) {
    %c0_i32 = arith.constant 0 : i32
    %c0_i32_0 = arith.constant 0 : i32
    %c0_i32_1 = arith.constant 0 : i32
    return %c0_i32, %c0_i32_0 : i32, i32
  }
  func.func @transform_7(%arg0: i32) -> (i32, i32) {
    %c0_i32 = arith.constant 0 : i32
    %c0_i32_0 = arith.constant 0 : i32
    return %arg0, %c0_i32 : i32, i32
  }
}

</mosaic_0001>

<bundles_post_ra>
// kernel: tpu_custom_call.1
= control target key start
LH: loop header
LB: loop body
LE: loop exit
PB: predicated region body
PF: predicated region fallthrough
CT: control target
= control target key end

     0   :  { %12 = vsyncpa [#allocation3], 0  ;;  %s574_s0 = inlined_call_operand.hbm [shape: f32[8,32], index: 0, kind: input, shape index: {}]   ;;  %s575_s1 = inlined_call_operand.hbm [shape: bf16[32,128], index: 1, kind: input, shape index: {}]   ;;  %s576_s2 = inlined_call_operand.vmem [shape: f32[1,128], index: 2, kind: input, shape index: {}]   ;;  %s577_s3 = inlined_call_operand.vmem [shape: bf16[128,128], index: 3, kind: input, shape index: {}]   ;;  %s578_s4 = inlined_call_operand.vmem [shape: f32[1,128], index: 4, kind: input, shape index: {}]   ;;  %s579_s5 = inlined_call_operand.vmem [shape: bf16[128,8], index: 5, kind: input, shape index: {}]   ;;  %s580_s6 = inlined_call_operand.vmem [shape: f32[1,8], index: 6, kind: input, shape index: {}]   ;;  %s581_s7 = inlined_call_operand.hbm [shape: f32[8,8], index: 7, kind: output, shape index: {}]  }
   0x1   :  { %13 = vsyncpa [#allocation6], 0 }
   0x2   :  { %14 = vsyncpa [#allocation4], 0  ;;  %s20_s26 = sshll.u32 %s574_s0, 4  ;;  %s463_s27 = smov [#allocation2]   ;;  %s21_s26 = int_to_ptr.hbm [resolvable:$true] %s20_s26 }
   0x3   :  { %s22_s28 = sshll.u32 %s463_s27, 4  ;;  %s30_s8 = sshll.u32 %s575_s1, 4  ;;  %s23_s28 = int_to_ptr.vmem [resolvable:$true] %s22_s28  ;;  %s31_s8 = int_to_ptr.hbm [resolvable:$true] %s30_s8 }
   0x4   :  { %25 = dma.hbm_to_vmem [thread:$0]  %s21_s26, 128, %s23_s28, [#allocation3]  }
   0x5   :  { %s464_s9 = smov [#allocation5]   ;;  %s465_s11 = smov 64  }
   0x6   :  { %s32_s10 = sshll.u32 %s464_s9, 4  ;;  %s466_s12 = smov 4   ;;  %s33_s10 = int_to_ptr.vmem [resolvable:$true] %s32_s10 }
   0x7   :  { %38 = dma.hbm_to_vmem [thread:$0]  %s31_s8, 256, %s33_s10, [#allocation6], %s465_s11, %s465_s11, %s466_s12  }
   0x8   :  { %457 = dma.done.wait [#allocation3], 128  }
   0x9   :  { %458 = vsyncadd [#allocation3], 4294967168 }
   0xa   :  { %459 = dma.done.wait [#allocation6], 256  }
   0xb   :  { %460 = vsyncadd [#allocation6], 4294967040  ;;  %v358_v0 = vld [vmem:[#allocation5 + $0x8] sm:$0xff]  ;;  %v366_v1 = vld [vmem:[%s577_s3 + $0x38] sm:$0xff]  ;;  %vm80_vm0 = vcmask 261120   ;;  %s467_s22 = smov [#allocation7]  }
   0xc   :  { %90 = vmatpush.bf16.msra.mxu0 %v358_v0  ;;  %v357_v2 = vld [vmem:[#allocation5] sm:$0xff]  ;;  %v58_v3 = vld [vmem:[#allocation2] sm:$0xff]  ;;  %167 = vmatpush.bf16.msra.mxu1 %v366_v1  ;;  %v365_v4 = vld [vmem:[%s577_s3 + $0x30] sm:$0xff]  ;;  %s273_s25 = sshll.u32 %s581_s7, 4  ;;  %vm264_vm1 = vcmask 64512   ;;  %s274_s25 = int_to_ptr.hbm [resolvable:$true] %s273_s25 }
   0xd   :  { %v59_v5 = vpack.c.bf16 %v58_v3, %v58_v3  ;;  %v364_v6 = vld [vmem:[%s577_s3 + $0x28] sm:$0xff]  ;;  %v363_v7 = vld [vmem:[%s577_s3 + $0x20] sm:$0xff]  ;;  %v362_v8 = vld [vmem:[%s577_s3 + $0x18] sm:$0xff] }
   0xe   :  { %v361_v9 = vld [vmem:[%s577_s3 + $0x10] sm:$0xff]  ;;  %v360_v10 = vld [vmem:[%s577_s3 + $0x8] sm:$0xff]  ;;  %v359_v11 = vld [vmem:[%s577_s3] sm:$0xff] }
   0xf   :  { %v374_v12 = vld [vmem:[%s579_s5 + $0x38] sm:$0xff]  ;;  %v373_v13 = vld [vmem:[%s579_s5 + $0x30] sm:$0xff]  ;;  %v372_v14 = vld [vmem:[%s579_s5 + $0x28] sm:$0xff] }
  0x10   :  { %91 = vmatpush.bf16.msra.mxu0 %v357_v2  ;;  %168 = vmatpush.bf16.msra.mxu1 %v365_v4  ;;  %v371_v15 = vld [vmem:[%s579_s5 + $0x20] sm:$0xff]  ;;  %v370_v16 = vld [vmem:[%s579_s5 + $0x18] sm:$0xff]  ;;  %v369_v17 = vld [vmem:[%s579_s5 + $0x10] sm:$0xff] }
  0x11   :  { %250 = vmatpush.bf16.msra.mxu2 %v374_v12  ;;  %v380_v18 = vld [vmem:[%s576_s2] ss:$0 sm:$0xff]  ;;  %v368_v24 = vld [vmem:[%s579_s5 + $0x8] sm:$0xff] }
  0x12   :  { %v367_v25 = vld [vmem:[%s579_s5] sm:$0xff]  ;;  %s271_s5 = sshll.u32 %s467_s22, 4  ;;  %s272_s5 = int_to_ptr.vmem [resolvable:$true] %s271_s5 }
  0x13   :  { %292 = vmatmul.msk.bf16.vlgmr.msra.gmra.mxu0 %vm80_vm0, %v59_v5  ;;  %v381_v26 = vld [vmem:[%s578_s4] ss:$0 sm:$0xff] }
  0x14   :  { %169 = vmatpush.bf16.msra.mxu1 %v364_v6  ;;  %v382_v32 = vld [vmem:[%s580_s6] ss:$0 sm:$0xff] }
  0x15   :  { %251 = vmatpush.bf16.msra.mxu2 %v373_v13 }
  0x18   :  { %170 = vmatpush.bf16.msra.mxu1 %v363_v7 }
  0x19   :  { %252 = vmatpush.bf16.msra.mxu2 %v372_v14 }
  0x1c   :  { %171 = vmatpush.bf16.msra.mxu1 %v362_v8 }
  0x1d   :  { %253 = vmatpush.bf16.msra.mxu2 %v371_v15 }
  0x20   :  { %172 = vmatpush.bf16.msra.mxu1 %v361_v9 }
  0x21   :  { %254 = vmatpush.bf16.msra.mxu2 %v370_v16 }
  0x24   :  { %173 = vmatpush.bf16.msra.mxu1 %v360_v10 }
  0x25   :  { %255 = vmatpush.bf16.msra.mxu2 %v369_v17 }
  0x28   :  { %174 = vmatpush.bf16.msra.mxu1 %v359_v11 }
  0x29   :  { %256 = vmatpush.bf16.msra.mxu2 %v368_v24 }
  0x2d   :  { %257 = vmatpush.bf16.msra.mxu2 %v367_v25 }
  0x90   :  { %v93_v19 = vpop.f32.mrf.mxu0 }
  0x91   :  { %v94_v20 = vadd.f32 %v380_v18, %v93_v19 }
  0x93   :  { %v97_v21 = vmax.f32 %v94_v20, 0.0 }
  0x95   :  { %v98_v22 = vpack.c.bf16 %v97_v21, %v97_v21 }
  0x97   :  { %175 = vmatmul.bf16.vlgmr.msra.gmra.mxu1 %v98_v22 }
  0x98   :  { %v95_v23 = vpop.f32.mrf.mxu0 }
 0x114   :  { %v176_v27 = vpop.f32.mrf.mxu1 }
 0x115   :  { %v177_v28 = vadd.f32 %v381_v26, %v176_v27 }
 0x117   :  { %v180_v29 = vmax.f32 %v177_v28, 0.0 }
 0x119   :  { %v181_v30 = vpack.c.bf16 %v180_v29, %v180_v29 }
 0x11b   :  { %258 = vmatmul.bf16.vlgmr.msra.gmra.mxu2 %v181_v30 }
 0x11c   :  { %v178_v31 = vpop.f32.mrf.mxu1 }
 0x19e   :  { %v259_v33 = vpop.f32.mrf.mxu2 }
 0x19f   :  { %v260_v34 = vadd.f32 %v382_v32, %v259_v33 }
 0x1a1   :  { %383 = vtanh.f32 %v260_v34 }
 0x1a6   :  { %v261_v35 = vpop.f32.mrf.mxu2 }
 0x1a7   :  { %v384_v36 = vpop.eup %383 }
 0x1a8   :  { %265 = vst.msk [vmem:[#allocation7] sm:$0xff] %vm264_vm1, %v384_v36 }
 0x1a9   :  { %276 = dma.vmem_to_hbm [thread:$0]  %s272_s5, 128, %s274_s25, [#allocation4]  }
 0x1aa   :  { %461 = dma.done.wait [#allocation4], 128  }
 0x1ab   :  { %462 = vsyncadd [#allocation4], 4294967168 }
 0x1ac   :  { %281 = vsyncpa [#allocation3], 1 }
 0x1ad   :  { %282 = vsyncpa [#allocation6], 1 }
 0x1ae   :  { %283 = vsyncpa [#allocation4], 1 }

// kernel: tpu_custom_call.1
= control target key start
LH: loop header
LB: loop body
LE: loop exit
PB: predicated region body
PF: predicated region fallthrough
CT: control target
= control target key end

     0   :  { %12 = vsyncpa [#allocation3], 0  ;;  %s574_s0 = inlined_call_operand.hbm [shape: f32[8,32], index: 0, kind: input, shape index: {}]   ;;  %s575_s1 = inlined_call_operand.hbm [shape: bf16[32,128], index: 1, kind: input, shape index: {}]   ;;  %s576_s2 = inlined_call_operand.vmem [shape: f32[1,128], index: 2, kind: input, shape index: {}]   ;;  %s577_s3 = inlined_call_operand.vmem [shape: bf16[128,128], index: 3, kind: input, shape index: {}]   ;;  %s578_s4 = inlined_call_operand.vmem [shape: f32[1,128], index: 4, kind: input, shape index: {}]   ;;  %s579_s5 = inlined_call_operand.vmem [shape: bf16[128,8], index: 5, kind: input, shape index: {}]   ;;  %s580_s6 = inlined_call_operand.vmem [shape: f32[1,8], index: 6, kind: input, shape index: {}]   ;;  %s581_s7 = inlined_call_operand.hbm [shape: f32[8,8], index: 7, kind: output, shape index: {}]  }
   0x1   :  { %13 = vsyncpa [#allocation6], 0 }
   0x2   :  { %14 = vsyncpa [#allocation4], 0  ;;  %s20_s26 = sshll.u32 %s574_s0, 4  ;;  %s463_s27 = smov [#allocation2]   ;;  %s21_s26 = int_to_ptr.hbm [resolvable:$true] %s20_s26 }
   0x3   :  { %s22_s28 = sshll.u32 %s463_s27, 4  ;;  %s30_s8 = sshll.u32 %s575_s1, 4  ;;  %s23_s28 = int_to_ptr.vmem [resolvable:$true] %s22_s28  ;;  %s31_s8 = int_to_ptr.hbm [resolvable:$true] %s30_s8 }
   0x4   :  { %25 = dma.hbm_to_vmem [thread:$0]  %s21_s26, 128, %s23_s28, [#allocation3]  }
   0x5   :  { %s464_s9 = smov [#allocation5]   ;;  %s465_s11 = smov 64  }
   0x6   :  { %s32_s10 = sshll.u32 %s464_s9, 4  ;;  %s466_s12 = smov 4   ;;  %s33_s10 = int_to_ptr.vmem [resolvable:$true] %s32_s10 }
   0x7   :  { %38 = dma.hbm_to_vmem [thread:$0]  %s31_s8, 256, %s33_s10, [#allocation6], %s465_s11, %s465_s11, %s466_s12  }
   0x8   :  { %457 = dma.done.wait [#allocation3], 128  }
   0x9   :  { %458 = vsyncadd [#allocation3], 4294967168 }
   0xa   :  { %459 = dma.done.wait [#allocation6], 256  }
   0xb   :  { %460 = vsyncadd [#allocation6], 4294967040  ;;  %v358_v0 = vld [vmem:[#allocation5 + $0x8] sm:$0xff]  ;;  %v366_v1 = vld [vmem:[%s577_s3 + $0x38] sm:$0xff]  ;;  %vm80_vm0 = vcmask 261120   ;;  %s467_s22 = smov [#allocation7]  }
   0xc   :  { %90 = vmatpush.bf16.msra.mxu0 %v358_v0  ;;  %v357_v2 = vld [vmem:[#allocation5] sm:$0xff]  ;;  %v58_v3 = vld [vmem:[#allocation2] sm:$0xff]  ;;  %167 = vmatpush.bf16.msra.mxu1 %v366_v1  ;;  %v365_v4 = vld [vmem:[%s577_s3 + $0x30] sm:$0xff]  ;;  %s273_s25 = sshll.u32 %s581_s7, 4  ;;  %vm264_vm1 = vcmask 64512   ;;  %s274_s25 = int_to_ptr.hbm [resolvable:$true] %s273_s25 }
   0xd   :  { %v59_v5 = vpack.c.bf16 %v58_v3, %v58_v3  ;;  %v364_v6 = vld [vmem:[%s577_s3 + $0x28] sm:$0xff]  ;;  %v363_v7 = vld [vmem:[%s577_s3 + $0x20] sm:$0xff]  ;;  %v362_v8 = vld [vmem:[%s577_s3 + $0x18] sm:$0xff] }
   0xe   :  { %v361_v9 = vld [vmem:[%s577_s3 + $0x10] sm:$0xff]  ;;  %v360_v10 = vld [vmem:[%s577_s3 + $0x8] sm:$0xff]  ;;  %v359_v11 = vld [vmem:[%s577_s3] sm:$0xff] }
   0xf   :  { %v374_v12 = vld [vmem:[%s579_s5 + $0x38] sm:$0xff]  ;;  %v373_v13 = vld [vmem:[%s579_s5 + $0x30] sm:$0xff]  ;;  %v372_v14 = vld [vmem:[%s579_s5 + $0x28] sm:$0xff] }
  0x10   :  { %91 = vmatpush.bf16.msra.mxu0 %v357_v2  ;;  %168 = vmatpush.bf16.msra.mxu1 %v365_v4  ;;  %v371_v15 = vld [vmem:[%s579_s5 + $0x20] sm:$0xff]  ;;  %v370_v16 = vld [vmem:[%s579_s5 + $0x18] sm:$0xff]  ;;  %v369_v17 = vld [vmem:[%s579_s5 + $0x10] sm:$0xff] }
  0x11   :  { %250 = vmatpush.bf16.msra.mxu2 %v374_v12  ;;  %v380_v18 = vld [vmem:[%s576_s2] ss:$0 sm:$0xff]  ;;  %v368_v24 = vld [vmem:[%s579_s5 + $0x8] sm:$0xff] }
  0x12   :  { %v367_v25 = vld [vmem:[%s579_s5] sm:$0xff]  ;;  %s271_s5 = sshll.u32 %s467_s22, 4  ;;  %s272_s5 = int_to_ptr.vmem [resolvable:$true] %s271_s5 }
  0x13   :  { %292 = vmatmul.msk.bf16.vlgmr.msra.gmra.mxu0 %vm80_vm0, %v59_v5  ;;  %v381_v26 = vld [vmem:[%s578_s4] ss:$0 sm:$0xff] }
  0x14   :  { %169 = vmatpush.bf16.msra.mxu1 %v364_v6  ;;  %v382_v32 = vld [vmem:[%s580_s6] ss:$0 sm:$0xff] }
  0x15   :  { %251 = vmatpush.bf16.msra.mxu2 %v373_v13 }
  0x18   :  { %170 = vmatpush.bf16.msra.mxu1 %v363_v7 }
  0x19   :  { %252 = vmatpush.bf16.msra.mxu2 %v372_v14 }
  0x1c   :  { %171 = vmatpush.bf16.msra.mxu1 %v362_v8 }
  0x1d   :  { %253 = vmatpush.bf16.msra.mxu2 %v371_v15 }
  0x20   :  { %172 = vmatpush.bf16.msra.mxu1 %v361_v9 }
  0x21   :  { %254 = vmatpush.bf16.msra.mxu2 %v370_v16 }
  0x24   :  { %173 = vmatpush.bf16.msra.mxu1 %v360_v10 }
  0x25   :  { %255 = vmatpush.bf16.msra.mxu2 %v369_v17 }
  0x28   :  { %174 = vmatpush.bf16.msra.mxu1 %v359_v11 }
  0x29   :  { %256 = vmatpush.bf16.msra.mxu2 %v368_v24 }
  0x2d   :  { %257 = vmatpush.bf16.msra.mxu2 %v367_v25 }
  0x90   :  { %v93_v19 = vpop.f32.mrf.mxu0 }
  0x91   :  { %v94_v20 = vadd.f32 %v380_v18, %v93_v19 }
  0x93   :  { %v97_v21 = vmax.f32 %v94_v20, 0.0 }
  0x95   :  { %v98_v22 = vpack.c.bf16 %v97_v21, %v97_v21 }
  0x97   :  { %175 = vmatmul.bf16.vlgmr.msra.gmra.mxu1 %v98_v22 }
  0x98   :  { %v95_v23 = vpop.f32.mrf.mxu0 }
 0x114   :  { %v176_v27 = vpop.f32.mrf.mxu1 }
 0x115   :  { %v177_v28 = vadd.f32 %v381_v26, %v176_v27 }
 0x117   :  { %v180_v29 = vmax.f32 %v177_v28, 0.0 }
 0x119   :  { %v181_v30 = vpack.c.bf16 %v180_v29, %v180_v29 }
 0x11b   :  { %258 = vmatmul.bf16.vlgmr.msra.gmra.mxu2 %v181_v30 }
 0x11c   :  { %v178_v31 = vpop.f32.mrf.mxu1 }
 0x19e   :  { %v259_v33 = vpop.f32.mrf.mxu2 }
 0x19f   :  { %v260_v34 = vadd.f32 %v382_v32, %v259_v33 }
 0x1a1   :  { %383 = vtanh.f32 %v260_v34 }
 0x1a6   :  { %v261_v35 = vpop.f32.mrf.mxu2 }
 0x1a7   :  { %v384_v36 = vpop.eup %383 }
 0x1a8   :  { %265 = vst.msk [vmem:[#allocation7] sm:$0xff] %vm264_vm1, %v384_v36 }
 0x1a9   :  { %276 = dma.vmem_to_hbm [thread:$0]  %s272_s5, 128, %s274_s25, [#allocation4]  }
 0x1aa   :  { %461 = dma.done.wait [#allocation4], 128  }
 0x1ab   :  { %462 = vsyncadd [#allocation4], 4294967168 }
 0x1ac   :  { %281 = vsyncpa [#allocation3], 1 }
 0x1ad   :  { %282 = vsyncpa [#allocation6], 1 }
 0x1ae   :  { %283 = vsyncpa [#allocation4], 1 }

</bundles_post_ra>
